<compile_context>
chip_gen: v7x
topology: tpu7x:2x2x1
jax: 0.10.0
libtpu: 0.0.40
codegen_flags: <defaults>
</compile_context>

<pallas_src>
import functools

import jax
import jax.numpy as jnp
from jax.experimental import pallas as pl
from jax.experimental.pallas import tpu as pltpu


def _round_up(x, m):
    return (x + m - 1) // m * m


def _tagging_kernel(x_ref, w_ref, b_ref, mask_ref, labels_ref,
                    prob_ref, loss_tok_ref, *, pad_id):
    # ---- logits = Linear(hiddens) for this row tile ------------------------
    x = x_ref[...]                                   # (TN, H)       bf16
    w = w_ref[...]                                   # (H, num_tags) bf16 (resident)
    logits = jnp.dot(x, w, preferred_element_type=jnp.float32)      # (TN, num_tags) f32
    logits = logits + b_ref[...]                     # (1, num_tags) broadcast

    # ---- logits += (1 - mask)[..., None] * -1e32 ---------------------------
    mask = mask_ref[...]                             # (TN, 1) f32
    logits = logits + (1.0 - mask) * jnp.float32(-1e32)

    # ---- prob = softmax(logits, dim=-1) ------------------------------------
    m = jnp.max(logits, axis=-1, keepdims=True)      # (TN, 1)
    e = jnp.exp(logits - m)                          # (TN, num_tags)
    s = jnp.sum(e, axis=-1, keepdims=True)           # (TN, 1)
    inv_s = pl.reciprocal(s, approx=False)           # one recip per row (exact)
    prob_ref[...] = (e * inv_s).astype(prob_ref.dtype)

    # ---- per-token CE loss partial (ignore_index == pad_id) ----------------
    labels = labels_ref[...]                         # (TN, 1) int32
    tag_iota = jax.lax.broadcasted_iota(jnp.int32, logits.shape, 1)
    onehot = (tag_iota == labels).astype(jnp.float32)               # (TN, num_tags)
    logsumexp = m + jnp.log(s)                                      # (TN, 1)
    logit_at_label = jnp.sum(logits * onehot, axis=-1, keepdims=True)
    valid = (labels != pad_id).astype(jnp.float32)                  # (TN, 1)
    loss_tok_ref[...] = (logsumexp - logit_at_label) * valid        # (TN, 1)


def tagging_fnn_decoder(hiddens, mask, weight, bias, labels=None, pad_id=0,
                        block_rows=512):
    """JAX/Pallas equivalent of TaggingFNNDecoder.forward."""
    B, T, H = hiddens.shape
    num_tags = weight.shape[0]
    N = B * T

    # Row-tile size: multiple of 8, capped at block_rows; pad N up to it.
    tile_n = min(block_rows, _round_up(N, 8))
    n_pad = _round_up(N, tile_n)
    num_tiles = n_pad // tile_n

    x = hiddens.reshape(N, H)
    m = mask.reshape(N, 1).astype(jnp.float32)
    if labels is None:
        lab = jnp.full((N, 1), pad_id, dtype=jnp.int32)
    else:
        lab = labels.reshape(N, 1).astype(jnp.int32)

    if n_pad != N:
        pad = n_pad - N
        x = jnp.pad(x, ((0, pad), (0, 0)))
        m = jnp.pad(m, ((0, pad), (0, 0)))                      # mask = 0
        lab = jnp.pad(lab, ((0, pad), (0, 0)), constant_values=pad_id)

    x = x.astype(jnp.bfloat16)                      # halve dominant HBM stream
    w = weight.T.astype(jnp.bfloat16)               # (H, num_tags)
    b = bias.reshape(1, num_tags).astype(jnp.float32)

    kernel = functools.partial(_tagging_kernel, pad_id=pad_id)
    prob, loss_tok = pl.pallas_call(
        kernel,
        grid=(num_tiles,),
        in_specs=[
            pl.BlockSpec((tile_n, H), lambda i: (i, 0)),         # x row tile
            pl.BlockSpec((H, num_tags), lambda i: (0, 0)),       # weight (resident)
            pl.BlockSpec((1, num_tags), lambda i: (0, 0)),       # bias   (resident)
            pl.BlockSpec((tile_n, 1), lambda i: (i, 0)),         # mask column
            pl.BlockSpec((tile_n, 1), lambda i: (i, 0)),         # labels column
        ],
        out_specs=[
            pl.BlockSpec((tile_n, num_tags), lambda i: (i, 0)),  # prob
            pl.BlockSpec((tile_n, 1), lambda i: (i, 0)),         # per-token loss
        ],
        out_shape=[
            jax.ShapeDtypeStruct((n_pad, num_tags), jnp.float32),
            jax.ShapeDtypeStruct((n_pad, 1), jnp.float32),
        ],
        compiler_params=pltpu.CompilerParams(
            dimension_semantics=("parallel",)),                  # megacore on v7x
    )(x, w, b, m, lab)

    prob = prob[:N].reshape(B, T, num_tags)
    if labels is None:
        return (prob,)

    # Global sum-then-divide (matches CrossEntropyLoss(ignore_index=pad_id)).
    # NOTE: divides by zero (NaN) if no label != pad_id, same as PyTorch.
    valid_count = jnp.sum((lab[:N, 0] != pad_id).astype(jnp.float32))
    loss = jnp.sum(loss_tok[:N, 0]) / valid_count
    return (prob, loss)


if __name__ == "__main__":
    key = jax.random.PRNGKey(0)
    B, T, H, NUM_TAGS, PAD_ID = 2, 7, 32, 16, 0
    k1, k2, k3, k4 = jax.random.split(key, 4)

    hiddens = jax.random.normal(k1, (B, T, H), dtype=jnp.float32)
    lengths = jnp.array([7, 5])
    mask = (jnp.arange(T)[None, :] < lengths[:, None]).astype(jnp.float32)
    labels = jax.random.randint(k2, (B, T), 1, NUM_TAGS)        # pad_id reserved
    labels = jnp.where(mask > 0, labels, PAD_ID).astype(jnp.int32)

    # Deterministic Linear params (PyTorch-style uniform(-1/sqrt(H), 1/sqrt(H)))
    bound = 1.0 / (H ** 0.5)
    weight = jax.random.uniform(k3, (NUM_TAGS, H), minval=-bound, maxval=bound,
                                dtype=jnp.float32)
    bias = jax.random.uniform(k4, (NUM_TAGS,), minval=-bound, maxval=bound,
                              dtype=jnp.float32)

    # block_rows=8 forces multiple row tiles + row padding (N=14 -> 16) so the
    # tiled / parallel / padded path is exercised even at this toy size.
    prob, loss = tagging_fnn_decoder(hiddens, mask, weight, bias,
                                     labels=labels, pad_id=PAD_ID, block_rows=8)
    jax.block_until_ready((prob, loss))

    # ---- pure-JAX reference (same bf16 input rounding as the kernel) -------
    hb = hiddens.astype(jnp.bfloat16).astype(jnp.float32)
    wb = weight.astype(jnp.bfloat16).astype(jnp.float32)
    logits_ref = jnp.einsum("bth,nh->btn", hb, wb) + bias
    logits_ref = logits_ref + (1.0 - mask)[..., None] * jnp.float32(-1e32)
    prob_ref = jax.nn.softmax(logits_ref, axis=-1)
    lse = jax.nn.logsumexp(logits_ref, axis=-1)
    ll = jnp.take_along_axis(logits_ref, labels[..., None], axis=-1)[..., 0]
    valid = (labels != PAD_ID).astype(jnp.float32)
    loss_ref = jnp.sum((lse - ll) * valid) / jnp.sum(valid)

    assert jnp.allclose(prob, prob_ref, atol=1e-3, rtol=1e-3), "prob mismatch"
    assert jnp.allclose(loss, loss_ref, atol=1e-3, rtol=1e-3), "loss mismatch"

    # Inference path (labels=None) returns (prob,) only.
    (prob_only,) = tagging_fnn_decoder(hiddens, mask, weight, bias,
                                       pad_id=PAD_ID, block_rows=8)
    jax.block_until_ready(prob_only)
    assert jnp.allclose(prob_only, prob_ref, atol=1e-3, rtol=1e-3), "prob mismatch (no labels)"

    print("KERNEL_OK")
</pallas_src>

<mosaic_0001>
module attributes {stable_mosaic.version = 11 : i64} {
  func.func @_tagging_kernel(%arg0: i32, %arg1: memref<8x32xbf16, #tpu.memory_space<vmem>>, %arg2: memref<32x16xbf16, #tpu.memory_space<vmem>>, %arg3: memref<1x16xf32, #tpu.memory_space<vmem>>, %arg4: memref<8x1xf32, #tpu.memory_space<vmem>>, %arg5: memref<8x1xi32, #tpu.memory_space<vmem>>, %arg6: memref<8x16xf32, #tpu.memory_space<vmem>>, %arg7: memref<8x1xf32, #tpu.memory_space<vmem>>) attributes {dimension_semantics = [#tpu.dimension_semantics<parallel>], iteration_bounds = array<i64: 2>, scalar_prefetch = 0 : i64, scratch_operands = 0 : i64, tpu.core_type = #tpu.core_type<tc>, window_params = [{transform_indices = @transform_0, window_bounds = array<i64: 8, 32>}, {pipeline_mode = #tpu.pipeline_mode<synchronous>, transform_indices = @transform_1, window_bounds = array<i64: 32, 16>}, {pipeline_mode = #tpu.pipeline_mode<synchronous>, transform_indices = @transform_2, window_bounds = array<i64: 1, 16>}, {transform_indices = @transform_3, window_bounds = array<i64: 8, 1>}, {transform_indices = @transform_4, window_bounds = array<i64: 8, 1>}, {transform_indices = @transform_5, window_bounds = array<i64: 8, 16>}, {transform_indices = @transform_6, window_bounds = array<i64: 8, 1>}]} {
    %c0 = arith.constant 0 : index
    %c0_0 = arith.constant 0 : index
    %0 = vector.load %arg1[%c0, %c0_0] : memref<8x32xbf16, #tpu.memory_space<vmem>>, vector<8x32xbf16>
    %c0_1 = arith.constant 0 : index
    %c0_2 = arith.constant 0 : index
    %1 = vector.load %arg2[%c0_1, %c0_2] : memref<32x16xbf16, #tpu.memory_space<vmem>>, vector<32x16xbf16>
    %cst = arith.constant dense<0.000000e+00> : vector<8x16xf32>
    %2 = tpu.matmul %0, %1, %cst {dimension_numbers = #tpu.dot_dimension_numbers<[1], [0], [0], [1], [0, 0, 1, 1], [], []>} : vector<8x32xbf16>, vector<32x16xbf16>, vector<8x16xf32> -> vector<8x16xf32>
    %c0_3 = arith.constant 0 : index
    %c0_4 = arith.constant 0 : index
    %3 = vector.load %arg3[%c0_3, %c0_4] : memref<1x16xf32, #tpu.memory_space<vmem>>, vector<1x16xf32>
    %4 = vector.broadcast %3 : vector<1x16xf32> to vector<8x16xf32>
    %5 = arith.addf %2, %4 : vector<8x16xf32>
    %c0_5 = arith.constant 0 : index
    %c0_6 = arith.constant 0 : index
    %6 = vector.load %arg4[%c0_5, %c0_6] : memref<8x1xf32, #tpu.memory_space<vmem>>, vector<8x1xf32>
    %cst_7 = arith.constant 1.000000e+00 : f32
    %7 = vector.broadcast %cst_7 : f32 to vector<8x1xf32>
    %8 = arith.subf %7, %6 : vector<8x1xf32>
    %cst_8 = arith.constant -1.000000e+32 : f32
    %9 = vector.broadcast %cst_8 : f32 to vector<8x1xf32>
    %10 = arith.mulf %8, %9 : vector<8x1xf32>
    %11 = vector.broadcast %10 : vector<8x1xf32> to vector<8x16xf32>
    %12 = arith.addf %5, %11 : vector<8x16xf32>
    %cst_9 = arith.constant dense<0xFF800000> : vector<8xf32>
    %13 = vector.multi_reduction <maximumf>, %12, %cst_9 [1] : vector<8x16xf32> to vector<8xf32>
    %14 = vector.shape_cast %13 : vector<8xf32> to vector<8x1xf32>
    %15 = vector.broadcast %14 : vector<8x1xf32> to vector<8x16xf32>
    %16 = arith.subf %12, %15 : vector<8x16xf32>
    %17 = math.exp %16 : vector<8x16xf32>
    %cst_10 = arith.constant dense<0.000000e+00> : vector<8xf32>
    %18 = vector.multi_reduction <add>, %17, %cst_10 [1] : vector<8x16xf32> to vector<8xf32>
    %19 = vector.shape_cast %18 : vector<8xf32> to vector<8x1xf32>
    %20 = tpu.reciprocal %19 : vector<8x1xf32> -> vector<8x1xf32>
    %21 = vector.broadcast %20 : vector<8x1xf32> to vector<8x16xf32>
    %22 = arith.mulf %17, %21 : vector<8x16xf32>
    %c0_11 = arith.constant 0 : index
    %c0_12 = arith.constant 0 : index
    %23 = vector.load %arg6[%c0_11, %c0_12] : memref<8x16xf32, #tpu.memory_space<vmem>>, vector<8x16xf32>
    tpu.vector_store %arg6[%c0_11, %c0_12], %22 {strides = array<i32>} : memref<8x16xf32, #tpu.memory_space<vmem>>, vector<8x16xf32>,
    %c0_13 = arith.constant 0 : index
    %c0_14 = arith.constant 0 : index
    %24 = vector.load %arg5[%c0_13, %c0_14] : memref<8x1xi32, #tpu.memory_space<vmem>>, vector<8x1xi32>
    %25 = tpu.iota {dimensions = array<i32: 1>} : vector<8x16xi32>
    %26 = vector.broadcast %24 : vector<8x1xi32> to vector<8x16xi32>
    %27 = arith.cmpi eq, %25, %26 : vector<8x16xi32>
    %28 = arith.extui %27 : vector<8x16xi1> to vector<8x16xi32>
    %29 = arith.sitofp %28 : vector<8x16xi32> to vector<8x16xf32>
    %30 = math.log %19 : vector<8x1xf32>
    %31 = arith.addf %14, %30 : vector<8x1xf32>
    %32 = arith.mulf %12, %29 : vector<8x16xf32>
    %cst_15 = arith.constant dense<0.000000e+00> : vector<8xf32>
    %33 = vector.multi_reduction <add>, %32, %cst_15 [1] : vector<8x16xf32> to vector<8xf32>
    %34 = vector.shape_cast %33 : vector<8xf32> to vector<8x1xf32>
    %c0_i32 = arith.constant 0 : i32
    %35 = vector.broadcast %c0_i32 : i32 to vector<8x1xi32>
    %36 = arith.cmpi ne, %24, %35 : vector<8x1xi32>
    %37 = arith.extui %36 : vector<8x1xi1> to vector<8x1xi32>
    %38 = arith.sitofp %37 : vector<8x1xi32> to vector<8x1xf32>
    %39 = arith.subf %31, %34 : vector<8x1xf32>
    %40 = arith.mulf %39, %38 : vector<8x1xf32>
    %c0_16 = arith.constant 0 : index
    %c0_17 = arith.constant 0 : index
    %41 = vector.load %arg7[%c0_16, %c0_17] : memref<8x1xf32, #tpu.memory_space<vmem>>, vector<8x1xf32>
    tpu.vector_store %arg7[%c0_16, %c0_17], %40 {strides = array<i32>} : memref<8x1xf32, #tpu.memory_space<vmem>>, vector<8x1xf32>,
    return
  }
  func.func @transform_0(%arg0: i32) -> (i32, i32) {
    %c0_i32 = arith.constant 0 : i32
    %c0_i32_0 = arith.constant 0 : i32
    return %arg0, %c0_i32 : i32, i32
  }
  func.func @transform_1(%arg0: i32) -> (i32, i32) {
    %c0_i32 = arith.constant 0 : i32
    %c0_i32_0 = arith.constant 0 : i32
    %c0_i32_1 = arith.constant 0 : i32
    return %c0_i32, %c0_i32_0 : i32, i32
  }
  func.func @transform_2(%arg0: i32) -> (i32, i32) {
    %c0_i32 = arith.constant 0 : i32
    %c0_i32_0 = arith.constant 0 : i32
    %c0_i32_1 = arith.constant 0 : i32
    return %c0_i32, %c0_i32_0 : i32, i32
  }
  func.func @transform_3(%arg0: i32) -> (i32, i32) {
    %c0_i32 = arith.constant 0 : i32
    %c0_i32_0 = arith.constant 0 : i32
    return %arg0, %c0_i32 : i32, i32
  }
  func.func @transform_4(%arg0: i32) -> (i32, i32) {
    %c0_i32 = arith.constant 0 : i32
    %c0_i32_0 = arith.constant 0 : i32
    return %arg0, %c0_i32 : i32, i32
  }
  func.func @transform_5(%arg0: i32) -> (i32, i32) {
    %c0_i32 = arith.constant 0 : i32
    %c0_i32_0 = arith.constant 0 : i32
    return %arg0, %c0_i32 : i32, i32
  }
  func.func @transform_6(%arg0: i32) -> (i32, i32) {
    %c0_i32 = arith.constant 0 : i32
    %c0_i32_0 = arith.constant 0 : i32
    return %arg0, %c0_i32 : i32, i32
  }
}

</mosaic_0001>

<bundles_post_ra>
// kernel: tpu_custom_call.1
= control target key start
LH: loop header
LB: loop body
LE: loop exit
PB: predicated region body
PF: predicated region fallthrough
CT: control target
= control target key end

     0   :  { %12 = vsyncpa [#allocation3], 0  ;;  %s857_s0 = inlined_call_operand.vmem [shape: bf16[16,32], index: 0, kind: input, shape index: {}]   ;;  %s858_s1 = inlined_call_operand.vmem [shape: bf16[32,16], index: 1, kind: input, shape index: {}]   ;;  %s859_s2 = inlined_call_operand.vmem [shape: f32[1,16], index: 2, kind: input, shape index: {}]   ;;  %s860_s3 = inlined_call_operand.vmem [shape: f32[16,1], index: 3, kind: input, shape index: {}]   ;;  %s861_s4 = inlined_call_operand.vmem [shape: s32[16,1], index: 4, kind: input, shape index: {}]   ;;  %s862_s5 = inlined_call_operand.hbm [shape: f32[16,16], index: 5, kind: output, shape index: {0}]   ;;  %s863_s6 = inlined_call_operand.vmem [shape: f32[16,1], index: 6, kind: output, shape index: {1}]  }
   0x1   :  { %14 = vsyncpa [#allocation3 + $0x1], 0  ;;  %s719_s21 = smov 0   ;;  %s721_s22 = smov 0  }
   0x2   :  { %s723_s23 = smov 0   ;;  %s725_s24 = smov 0  }
   0x3 LB: > { %s740_s25 = sadd.s32 4294967295, %s678_s24   ;;  %s534_s26 = sadd.s32 4294967294, %s678_s24   ;;  %s678_s24 = sphi %s725_s24, %s869_s24   ;;  %s674_s23 = sphi %s723_s23, %s868_s23   ;;  %s670_s22 = sphi %s721_s22, %s867_s22   ;;  %s666_s21 = sphi %s719_s21, %s866_s21  }
   0x4   : > { %s744_s27 = sadd.s32 1, %s678_s24   ;;  %s147_s28 = sadd.s32 1, %s674_s23 }
   0x5   : > { %s144_s29 = ssub.s32 %s678_s24, %s744_s27  ;;  %p157_p0 = scmp.ne.s32.totalorder %s674_s23, %s670_s22 }
   0x6   : > { %p145_p1 = scmp.eq.s32.totalorder %s144_s29, 0  ;;  %p158_p2 = scmp.eq.s32.totalorder %s740_s25, 1 }
   0x7   : > { %p163_p3 = scmp.ne.s32.totalorder %s670_s22, %s666_s21  ;;  %p164_p4 = scmp.eq.s32.totalorder %s534_s26, 1 }
   0x8   : > { %s755_s30 = scalar_select %p145_p1, %s674_s23, %s147_s28  }
   0x9   : > { %p757_p5 = por %p158_p2, %p157_p0  ;;  %p761_p6 = por %p164_p4, %p163_p3 }
   0xa   : > { %p537_p7 = scmp.ge.s32.totalorder %s678_s24, 1  ;;  %p235_p8 = scmp.lt.s32.totalorder %s678_s24, 3 }
   0xc   : > { %p236_p9 = pnand %p537_p7, %p235_p8 }
   0xd   : > { %v608_v0 = vld [vmem:[%s858_s1] sm:$0xff] (!%p236_p9)   ;;  %v680_v1 = vmov (!%p236_p9), 0.0   ;;  %v609_v2 = vld [vmem:[%s858_s1 + $0x8] sm:$0xff] (!%p236_p9)   ;;  %vm681_vm0 = vmmov (!%p236_p9), 0   ;;  %p276_p10 = scmp.lt.s32.totalorder (!%p236_p9), %s740_s25, 1  ;;  %v682_v3 = vmov (!%p236_p9), 0   ;;  %v384_v9 = vlaneseq (!%p236_p9) }
   0xe   : > { %239 = sbr.rel (%p236_p9) target bundleno = 576 (0x240), region = 40  ;;  %556 = vmatprep.subr.bf16.mxu0 (!%p236_p9), %v680_v1  ;;  %560 = vmatprep.mubr.msk.bf16.mxu0 (!%p236_p9), %vm681_vm0, %v680_v1  ;;  %vm317_vm1 = vcmask (!%p236_p9), 261120   ;;  %v543_v12 = vld [vmem:[%s859_s2] ss:$0 sm:$0xff] (!%p236_p9)  ;;  %vm370_vm3 = vcmask (!%p236_p9), 130048   ;;  %s267_s12 = sand.u32 (!%p236_p9), 1, %s670_s22  }
   0xf   : > { %557 = vmatpush3.bf16.msra.mxu0 (!%p236_p9), %v608_v0  ;;  %607 = vset.pattern.permute.xlu1 (!%p236_p9), %v682_v3  ;;  %v385_v10 = vand.u32 (!%p236_p9), 127, %v384_v9  ;;  %s683_s28 = smov (!%p236_p9), [#allocation2]  }
  0x10   : > { %558 = vmatprep.subr.bf16.mxu0 (!%p236_p9), %v680_v1  ;;  %606 = vset.pattern.permute.xlu0 (!%p236_p9), %v682_v3  ;;  %s620_s29 = sshll.u32 (!%p236_p9), %s683_s28, 4  ;;  %s621_s29 = int_to_ptr.vmem [resolvable:$false] %s620_s29 }
  0x13   : > { %559 = vmatpush3.bf16.msra.mxu0 (!%p236_p9), %v609_v2 }
  0x15   : > { %s277_s13 = scalar_select %p276_p10, %s740_s25, 1 }
  0x17   : > { %s539_s14 = sshll.u32 %s277_s13, 2  ;;  %s778_s15 = sshll.u32 %s277_s13, 3 }
  0x18   : > { %s279_s18 = scalar_lea.vmem %s857_s0, %s539_s14  ;;  %s287_s26 = scalar_lea.vmem %s861_s4, %s778_s15 }
  0x19   : > { %v293_v4 = vld [vmem:[%s279_s18] sm:$0xf]  ;;  %s283_s9 = scalar_lea.vmem %s860_s3, %s778_s15  ;;  %s538_s13 = sshll.u32 %s267_s12, 3 }
  0x1a   : > { %v787_v5 = vld [vmem:[%s287_s26] sm:$0xff]  ;;  %561 = vmatmul.mubr.msk.bf16.vlgmr.msra.gmra.mrb[0].mxu0 %vm317_vm1, %v293_v4  ;;  %s550_s14 = sshll.u32 %s740_s25, 7  ;;  %s269_s16 = scalar_lea.vmem [#allocation2], %s538_s13 }
  0x1b   : > { %387 = vperm.xlu1 %607, %v787_v5   ;;  %v361_v6 = vld [vmem:[%s283_s9] sm:$0xff]  ;;  %s424_s17 = sshll.u32 %s269_s16, 4  ;;  %s806_s20 = scalar_lea.hbm %s862_s5, %s550_s14  ;;  %vm399_vm4 = vcmp.ne.s32.totalorder %v787_v5, 0  ;;  %s808_s17 = int_to_ptr.vmem [resolvable:$true] %s424_s17 }
  0x1c   : > { %v362_v7 = vsub.f32 1.0, %v361_v6  ;;  %s407_s25 = scalar_lea.sflag [#allocation3], %s267_s12  ;;  %s616_s26 = scalar_lea.vmem %s808_s17, 128 }
  0x1d   : > { %p617_p11 = scmp.ne.s32.totalorder %s808_s17, %s616_s26  ;;  %s622_s9 = scalar_lea.vmem %s621_s29, 256 }
  0x1e   : > { %v363_v8 = vmul.f32 -1e+32, %v362_v7  ;;  %p623_p0 = scmp.lt.s32.totalorder %s808_s17, %s621_s29  ;;  %p624_p1 = scmp.lt.s32.totalorder %s622_s9, %s616_s26 }
  0x1f   : > { %p618_p12 = pnand %p617_p11, %p757_p5 }
  0x20   : > { %366 = vperm.xlu0 %606, %v363_v8   ;;  %p625_p2 = por %p624_p1, %p623_p0 }
  0x21   : > { %p619_p13 = pneg %p618_p12 }
  0x23   : > { %p626_p3 = pnand %p625_p2, %p619_p13 }
  0x9a   : > { %v388_v11 = vpop.permute.xlu1 %387 }
  0x9b   : > { %vm389_vm2 = vcmp.eq.s32.totalorder %v385_v10, %v388_v11 }
  0x9c   : > { %v547_v17 = vsel %vm389_vm2, 1.0, %v680_v1 }
  0x9f   : > { %v367_v14 = vpop.permute.xlu0 %366 }
  0xed   : > { %v355_v13 = vpop.f32.mrb[0].mxu0 }
  0xee   : > { %v356_v15 = vadd.f32 %v543_v12, %v355_v13  ;;  %v562_v16 = vpop.f32.mrb[1].mxu0 }
  0xef   : > { %v358_v18 = vpop.f32.mrb[2].mxu0 }
  0xf0   : > { %v369_v19 = vadd.f32 %v367_v14, %v356_v15  ;;  %v563_v20 = vpop.f32.mrb[3].mxu0 }
  0xf2   : > { %v371_v21 = vsel %vm370_vm3, %v369_v19, -inf  ;;  %v395_v22 = vmul.f32 %v547_v17, %v369_v19 }
  0xf3   : > { %372 = vmax.xlane.f32.xlu0 %v371_v21 }
  0xf4   : > { %v396_v23 = vsel %vm370_vm3, %v395_v22, 0.0 }
  0xf7   : > { %397 = vadd.xlane.f32.xlu0 %v396_v23 }
 0x180   : > { %v373_v24 = vpop.xlane.xlu0 %372 }
 0x181   : > { %v374_v25 = vsub.f32 %v369_v19, %v373_v24 }
 0x183   : > { %v375_v26 = vmul.f32 1.442695, %v374_v25 }
 0x185   : > { %610 = vpow2.f32 %v375_v26 }
 0x18f   : > { %v611_v27 = vpop.eup %610 }
 0x190   : > { %v377_v28 = vsel %vm370_vm3, %v611_v27, 0.0 }
 0x191   : > { %378 = vadd.xlane.f32.xlu1 %v377_v28 }
 0x21e   : > { %v379_v29 = vpop.xlane.xlu1 %378 }
 0x21f   : > { %612 = vrcp.f32 %v379_v29 }
 0x220   : > { %614 = vlog2.f32 %v379_v29 }
 0x229   : > { %v613_v30 = vpop.eup %612 }
 0x22a   : > { %v615_v31 = vpop.eup %614  ;;  %v381_v32 = vmul.f32 %v613_v30, %v611_v27 }
 0x22b   : > { %v393_v33 = vmul.f32 0.6931472, %v615_v31 }
 0x22c   : > { %382 = vst.msk [vmem:[%s269_s16] sm:$0xff] %vm370_vm3, %v381_v32 }
 0x22d   : > { %v394_v34 = vadd.f32 %v393_v33, %v373_v24 }
 0x22e   : > { %629 = shalt.err (!%p626_p3)
}
 0x22f   : > { %s630_s10 = scalar_lea.hbm %s806_s20, 128  ;;  %s634_s13 = scalar_lea.hbm %s862_s5, 256 }
 0x230   : > { %p631_p4 = scmp.ne.s32.totalorder %s806_s20, %s630_s10  ;;  %p635_p9 = scmp.lt.u32.totalorder %s806_s20, %s862_s5 }
 0x231   : > { %p636_p10 = scmp.lt.u32.totalorder %s634_s13, %s630_s10  ;;  %p638_p12 = scmp.lt.u32.totalorder %s630_s10, %s806_s20 }
 0x232   : > { %p632_p7 = pnand %p631_p4, %p757_p5 }
 0x233   : > { %p637_p11 = por %p636_p10, %p635_p9 }
 0x234   : > { %p633_p8 = pneg %p632_p7 }
 0x235   : > { %p639_p13 = por %p638_p12, %p637_p11 }
 0x237   : > { %p640_p0 = pnand %p639_p13, %p633_p8 }
 0x239   : > { %643 = shalt.err (!%p640_p0)
}
 0x23a   : > { %564 = dma.vmem_to_hbm [thread:$0]  (%p757_p5), %s808_s17, 128, %s806_s20, %s407_s25   ;;  %v548_v35 = vsel %vm399_vm4, 1.0, %v680_v1  ;;  %v398_v36 = vpop.xlane.xlu0 %397  ;;  %vm404_vm5 = vcmask 7168  }
 0x23b   : > { %v402_v37 = vsub.f32 %v394_v34, %v398_v36  ;;  %s291_s26 = scalar_lea.vmem %s863_s6, %s778_s15 }
 0x23d   : > { %v403_v38 = vmul.f32 %v548_v35, %v402_v37 }
 0x23f   : > { %405 = vst.msk [vmem:[%s291_s26] sm:$0xff] %vm404_vm5, %v403_v38 }
 0x240 PF: > { %p570_p1 = scmp.ge.s32.totalorder %s678_s24, 2  ;;  %s439_s7 = sand.u32 1, %s666_s21  }
 0x241   : > { %s440_s17 = scalar_lea.sflag [#allocation3], %s439_s7 }
 0x242   : > { %p567_p5 = pnand %p570_p1, %p761_p6 }
 0x244   : > { %661 = dma.done.wait (!%p567_p5), %s440_s17, 128  }
 0x245   : > { %663 = vsyncadd (!%p567_p5), %s440_s17, 4294967168  ;;  %p17_p2 = scmp.ge.s32.totalorder %s744_s27, 4   ;;  %s866_s21 = smov %s670_s22 }
 0x246   : > { %s867_s22 = smov %s674_s23  ;;  %s868_s23 = smov %s755_s30 }
 0x247   : > { %s869_s24 = smov %s744_s27  ;;  %19 = sbr.rel (!%p17_p2) target bundleno = 3 (0x3), region = 93 }
 0x24e   :  { %452 = vsyncpa [#allocation3], 1 }
 0x24f   :  { %454 = vsyncpa [#allocation3 + $0x1], 1 }

</bundles_post_ra>
